<compile_context>
chip_gen: v7x
topology: tpu7x:2x2x1
jax: 0.10.0
libtpu: 0.0.40
codegen_flags: <defaults>
</compile_context>

<pallas_src>
import functools

import jax
import jax.numpy as jnp
from jax import lax
from jax.experimental import pallas as pl
from jax.experimental.pallas import tpu as pltpu


@functools.lru_cache(maxsize=None)
def _chip_info():
    """Best-effort (vmem_capacity_bytes, tensorcores_per_chip); safe defaults."""
    vmem_cap = None
    n_cores = 1
    try:
        vmem_cap = int(pltpu.get_tpu_info().vmem_capacity_bytes)
    except Exception:
        vmem_cap = None
    kind = ""
    try:
        kind = (jax.devices()[0].device_kind or "").lower()
    except Exception:
        pass
    if "v7" in kind or "7x" in kind:
        n_cores = 2
    if vmem_cap is None:
        if "v2" in kind or "v3" in kind:
            vmem_cap = 16 << 20
        elif "v4" in kind or "v5" in kind or "v6" in kind:
            vmem_cap = 128 << 20
        else:
            vmem_cap = 64 << 20          # conservative (v7x per-TC) default
    return vmem_cap, n_cores


def _focal_math(x, t, *, alpha, gamma, smoothing):
    """Elementwise focal-loss-with-label-smoothing math in f32."""
    if float(smoothing) != 0.0:
        # label smoothing: t = t * (1 - s) + 0.5 * s
        t = t * (1.0 - float(smoothing)) + 0.5 * float(smoothing)
    # numerically-stable BCE-with-logits (PyTorch formulation):
    #   bce = max(x, 0) - x*t + log(1 + exp(-|x|))
    bce = jnp.maximum(x, 0.0) - x * t + jnp.log1p(jnp.exp(-jnp.abs(x)))
    pt = jnp.exp(-bce)
    one_m_pt = 1.0 - pt
    g = float(gamma)
    if g == 2.0:
        focal = one_m_pt * one_m_pt          # default: plain square, no pow
    elif g == 1.0:
        focal = one_m_pt
    elif g == 0.0:
        focal = jnp.ones_like(one_m_pt)
    elif g.is_integer() and 0.0 < g <= 8.0:
        focal = lax.integer_pow(one_m_pt, int(g))
    else:
        focal = jnp.power(one_m_pt, g)       # exp(g*log(.)) on EUP
    loss = focal * bce
    if float(alpha) != 1.0:
        loss = float(alpha) * loss
    return loss


def _elementwise_kernel(x_ref, t_ref, o_ref, *, alpha, gamma, smoothing):
    x = x_ref[...].astype(jnp.float32)
    t = t_ref[...].astype(jnp.float32)
    loss = _focal_math(x, t, alpha=alpha, gamma=gamma, smoothing=smoothing)
    # Ragged last row-block (if any) relies on Pallas clipping OOB stores.
    o_ref[...] = loss.astype(o_ref.dtype)


def _reduce_kernel(x_ref, t_ref, o_ref, *, alpha, gamma, smoothing,
                   ragged, rows_in_last):
    x = x_ref[...].astype(jnp.float32)
    t = t_ref[...].astype(jnp.float32)
    loss = _focal_math(x, t, alpha=alpha, gamma=gamma, smoothing=smoothing)

    if ragged:
        i = pl.program_id(0)
        last = pl.num_programs(0) - 1

        @pl.when(i < last)
        def _():
            o_ref[...] = jnp.full(o_ref.shape, jnp.sum(loss), jnp.float32)

        @pl.when(i == last)
        def _():
            # Row-index comparison only (no flattened linear index -> no
            # int32 overflow for very large tensors).
            local_row = lax.broadcasted_iota(jnp.int32, loss.shape, 0)
            masked = jnp.where(local_row < rows_in_last, loss, 0.0)
            o_ref[...] = jnp.full(o_ref.shape, jnp.sum(masked), jnp.float32)
    else:
        o_ref[...] = jnp.full(o_ref.shape, jnp.sum(loss), jnp.float32)


def _choose_layout(n, itemsize, *, target_tile_bytes, split_for_cores):
    """Pick (lane, n_main, rows, tile_r, grid) for a flattened n-element tensor.

    n_main is the lane-aligned prefix length handled by the kernel; the
    (n - n_main) < lane tail is handled with plain jnp in the wrapper.
    """
    sub = max(8, 32 // max(itemsize, 1))          # sublane packing unit
    candidates = (2048, 1024, 512, 256, 128)
    lane = None
    for c in candidates:                          # prefer fully sublane-dense layouts
        if n % (c * sub) == 0:
            lane = c
            break
    if lane is None:
        for c in candidates:                      # any divisor: no tail at all
            if n % c == 0:
                lane = c
                break
    if lane is None:
        lane = 128                                # rare: jnp handles the tail
    n_main = (n // lane) * lane
    rows = n_main // lane
    if rows == 0:
        return lane, 0, 0, 0, 0

    target_rows = max(sub, (target_tile_bytes // (itemsize * lane)) // sub * sub)
    tile_r = rows if rows <= target_rows else target_rows
    grid = pl.cdiv(rows, tile_r)

    # Multi-TC chips (v7x): avoid degenerating to a single grid step so both
    # TensorCores get work ('none' path only; pure overhead elsewhere).
    if split_for_cores > 1 and grid == 1 and rows >= 2 * sub:
        tile_r = max(sub, pl.cdiv(pl.cdiv(rows, split_for_cores), sub) * sub)
        grid = pl.cdiv(rows, tile_r)
    return lane, n_main, rows, tile_r, grid


def smooth_focal_loss(inputs, targets, *, reduction="none", alpha=1.0,
                      gamma=2.0, smoothing=0.0):
    assert inputs.shape == targets.shape
    assert 0.0 <= smoothing < 1.0
    orig_shape = inputs.shape
    orig_dtype = inputs.dtype
    n = inputs.size
    itemsize = jnp.dtype(orig_dtype).itemsize

    vmem_cap, n_cores = _chip_info()
    # Leave headroom for f32 elementwise intermediates / compiler scratch.
    vmem_limit = max(min(vmem_cap - (16 << 20), 96 << 20), 12 << 20)
    reduce_mode = reduction in ("sum", "mean")
    if reduce_mode:
        # 2 inputs x double buffer streamed; output block is tiny.
        tile_bytes = min(vmem_limit // 8, 12 << 20)
    else:
        # 2 inputs + 1 output, double buffered = 6 streamed tile buffers.
        tile_bytes = min(vmem_limit // 12, 8 << 20)

    split = 1 if reduce_mode else n_cores
    lane, n_main, rows, tile_r, grid = _choose_layout(
        n, itemsize, target_tile_bytes=tile_bytes, split_for_cores=split)

    x_flat = inputs.reshape(-1)
    t_flat = targets.reshape(-1)
    n_tail = n - n_main

    in_specs = [
        pl.BlockSpec((tile_r, lane), lambda i: (i, 0)),
        pl.BlockSpec((tile_r, lane), lambda i: (i, 0)),
    ] if n_main else []

    if reduce_mode:
        total = jnp.float32(0.0)
        if n_main:
            x2 = x_flat[:n_main].reshape(rows, lane)
            t2 = t_flat[:n_main].reshape(rows, lane)
            ragged = (rows % tile_r) != 0
            rows_in_last = rows - (grid - 1) * tile_r
            kernel = functools.partial(
                _reduce_kernel, alpha=float(alpha), gamma=float(gamma),
                smoothing=float(smoothing), ragged=ragged,
                rows_in_last=rows_in_last)
            partials = pl.pallas_call(
                kernel,
                out_shape=jax.ShapeDtypeStruct((grid, 8, 128), jnp.float32),
                grid_spec=pltpu.PrefetchScalarGridSpec(
                    num_scalar_prefetch=0,
                    grid=(grid,),
                    in_specs=in_specs,
                    out_specs=pl.BlockSpec((1, 8, 128), lambda i: (i, 0, 0)),
                ),
                compiler_params=pltpu.CompilerParams(
                    dimension_semantics=("parallel",),
                    vmem_limit_bytes=int(vmem_limit)),
                cost_estimate=pl.CostEstimate(
                    flops=int(12 * n_main),
                    transcendentals=int(3 * n_main),
                    bytes_accessed=int(2 * n_main * itemsize + grid * 8 * 128 * 4)),
            )(x2, t2)
            total = jnp.sum(partials[:, 0, 0])
        if n_tail:
            xt = x_flat[n_main:].astype(jnp.float32)
            tt = t_flat[n_main:].astype(jnp.float32)
            total = total + jnp.sum(
                _focal_math(xt, tt, alpha=alpha, gamma=gamma, smoothing=smoothing))
        if reduction == "mean":
            total = total / jnp.float32(n)
        return total.astype(orig_dtype)

    # reduction == 'none'
    parts = []
    if n_main:
        x2 = x_flat[:n_main].reshape(rows, lane)
        t2 = t_flat[:n_main].reshape(rows, lane)
        kernel = functools.partial(
            _elementwise_kernel, alpha=float(alpha), gamma=float(gamma),
            smoothing=float(smoothing))
        out2 = pl.pallas_call(
            kernel,
            out_shape=jax.ShapeDtypeStruct((rows, lane), orig_dtype),
            grid_spec=pltpu.PrefetchScalarGridSpec(
                num_scalar_prefetch=0,
                grid=(grid,),
                in_specs=in_specs,
                out_specs=pl.BlockSpec((tile_r, lane), lambda i: (i, 0)),
            ),
            compiler_params=pltpu.CompilerParams(
                dimension_semantics=("parallel",),
                vmem_limit_bytes=int(vmem_limit)),
            cost_estimate=pl.CostEstimate(
                flops=int(12 * n_main),
                transcendentals=int(3 * n_main),
                bytes_accessed=int(3 * n_main * itemsize)),
        )(x2, t2)
        parts.append(out2.reshape(-1))
    if n_tail:
        # TODO(synk): the < lane-element tail is computed with plain jnp ops;
        # the prefix slice may still be materialized by XLA, but this avoids
        # the previous pad + full-tensor slice HBM round trips.
        xt = x_flat[n_main:].astype(jnp.float32)
        tt = t_flat[n_main:].astype(jnp.float32)
        parts.append(
            _focal_math(xt, tt, alpha=alpha, gamma=gamma,
                        smoothing=smoothing).astype(orig_dtype))
    out = parts[0] if len(parts) == 1 else jnp.concatenate(parts)
    return out.reshape(orig_shape)


def _reference(inputs, targets, alpha=1.0, gamma=2.0, smoothing=0.0):
    t = targets * (1.0 - smoothing) + 0.5 * smoothing
    x = inputs
    bce = jnp.maximum(x, 0.0) - x * t + jnp.log1p(jnp.exp(-jnp.abs(x)))
    pt = jnp.exp(-bce)
    return alpha * (1.0 - pt) ** gamma * bce


if __name__ == "__main__":
    key = jax.random.PRNGKey(0)
    k1, k2, k3, k4 = jax.random.split(key, 4)

    # NCHW, consistent with typical PyTorch usage of this loss.
    shape = (2, 4, 16, 16)
    inputs = jax.random.normal(k1, shape, dtype=jnp.float32)
    targets = (jax.random.uniform(k2, shape) > 0.5).astype(jnp.float32)

    ref = _reference(inputs, targets, alpha=1.0, gamma=2.0, smoothing=0.1)

    # reduction='none' (module default)
    out = smooth_focal_loss(inputs, targets, reduction="none",
                            alpha=1.0, gamma=2.0, smoothing=0.1)
    jax.block_until_ready(out)
    assert out.shape == shape and out.dtype == inputs.dtype
    assert jnp.allclose(out, ref, atol=1e-5, rtol=1e-5)

    # fused in-kernel reductions (per-block partials + tiny XLA finish)
    s = smooth_focal_loss(inputs, targets, reduction="sum",
                          alpha=1.0, gamma=2.0, smoothing=0.1)
    jax.block_until_ready(s)
    assert jnp.allclose(s, ref.sum(), rtol=1e-4, atol=1e-3)

    m = smooth_focal_loss(inputs, targets, reduction="mean",
                          alpha=1.0, gamma=2.0, smoothing=0.1)
    jax.block_until_ready(m)
    assert jnp.allclose(m, ref.mean(), rtol=1e-4, atol=1e-4)

    # Lane-misaligned element count: exercises aligned-prefix kernel + jnp tail.
    shape2 = (7, 300)
    x2 = jax.random.normal(k3, shape2, dtype=jnp.float32)
    t2 = (jax.random.uniform(k4, shape2) > 0.5).astype(jnp.float32)
    ref2 = _reference(x2, t2, alpha=1.0, gamma=2.0, smoothing=0.0)

    o2 = smooth_focal_loss(x2, t2, reduction="none")
    jax.block_until_ready(o2)
    assert o2.shape == shape2 and jnp.allclose(o2, ref2, atol=1e-5, rtol=1e-5)

    m2 = smooth_focal_loss(x2, t2, reduction="mean")
    jax.block_until_ready(m2)
    assert jnp.allclose(m2, ref2.mean(), rtol=1e-4, atol=1e-4)

    print("KERNEL_OK")
</pallas_src>

<mosaic_0001>
module attributes {stable_mosaic.version = 11 : i64} {
  func.func @_elementwise_kernel(%arg0: i32, %arg1: memref<8x256xf32, #tpu.memory_space<vmem>>, %arg2: memref<8x256xf32, #tpu.memory_space<vmem>>, %arg3: memref<8x256xf32, #tpu.memory_space<vmem>>) attributes {dimension_semantics = [#tpu.dimension_semantics<parallel>], iteration_bounds = array<i64: 1>, scalar_prefetch = 0 : i64, scratch_operands = 0 : i64, tpu.core_type = #tpu.core_type<tc>, window_params = [{transform_indices = @transform_0, window_bounds = array<i64: 8, 256>}, {transform_indices = @transform_1, window_bounds = array<i64: 8, 256>}, {transform_indices = @transform_2, window_bounds = array<i64: 8, 256>}]} {
    %c0 = arith.constant 0 : index
    %c0_0 = arith.constant 0 : index
    %0 = vector.load %arg1[%c0, %c0_0] : memref<8x256xf32, #tpu.memory_space<vmem>>, vector<8x256xf32>
    %c0_1 = arith.constant 0 : index
    %c0_2 = arith.constant 0 : index
    %1 = vector.load %arg2[%c0_1, %c0_2] : memref<8x256xf32, #tpu.memory_space<vmem>>, vector<8x256xf32>
    %cst = arith.constant 0.899999976 : f32
    %2 = vector.broadcast %cst : f32 to vector<8x256xf32>
    %3 = arith.mulf %1, %2 : vector<8x256xf32>
    %cst_3 = arith.constant 5.000000e-02 : f32
    %4 = vector.broadcast %cst_3 : f32 to vector<8x256xf32>
    %5 = arith.addf %3, %4 : vector<8x256xf32>
    %cst_4 = arith.constant 0.000000e+00 : f32
    %6 = vector.broadcast %cst_4 : f32 to vector<8x256xf32>
    %7 = arith.maximumf %0, %6 : vector<8x256xf32>
    %8 = arith.mulf %0, %5 : vector<8x256xf32>
    %9 = arith.subf %7, %8 : vector<8x256xf32>
    %10 = math.absf %0 : vector<8x256xf32>
    %cst_5 = arith.constant 0.000000e+00 : f32
    %11 = vector.broadcast %cst_5 : f32 to vector<8x256xf32>
    %12 = arith.subf %11, %10 : vector<8x256xf32>
    %13 = math.exp %12 : vector<8x256xf32>
    %14 = math.log1p %13 : vector<8x256xf32>
    %15 = arith.addf %9, %14 : vector<8x256xf32>
    %cst_6 = arith.constant 0.000000e+00 : f32
    %16 = vector.broadcast %cst_6 : f32 to vector<8x256xf32>
    %17 = arith.subf %16, %15 : vector<8x256xf32>
    %18 = math.exp %17 : vector<8x256xf32>
    %cst_7 = arith.constant 1.000000e+00 : f32
    %19 = vector.broadcast %cst_7 : f32 to vector<8x256xf32>
    %20 = arith.subf %19, %18 : vector<8x256xf32>
    %21 = arith.mulf %20, %20 : vector<8x256xf32>
    %22 = arith.mulf %21, %15 : vector<8x256xf32>
    %c0_8 = arith.constant 0 : index
    %c0_9 = arith.constant 0 : index
    %23 = vector.load %arg3[%c0_8, %c0_9] : memref<8x256xf32, #tpu.memory_space<vmem>>, vector<8x256xf32>
    tpu.vector_store %arg3[%c0_8, %c0_9], %22 {strides = array<i32>} : memref<8x256xf32, #tpu.memory_space<vmem>>, vector<8x256xf32>,
    return
  }
  func.func @transform_0(%arg0: i32) -> (i32, i32) {
    %c0_i32 = arith.constant 0 : i32
    %c0_i32_0 = arith.constant 0 : i32
    return %arg0, %c0_i32 : i32, i32
  }
  func.func @transform_1(%arg0: i32) -> (i32, i32) {
    %c0_i32 = arith.constant 0 : i32
    %c0_i32_0 = arith.constant 0 : i32
    return %arg0, %c0_i32 : i32, i32
  }
  func.func @transform_2(%arg0: i32) -> (i32, i32) {
    %c0_i32 = arith.constant 0 : i32
    %c0_i32_0 = arith.constant 0 : i32
    return %arg0, %c0_i32 : i32, i32
  }
}

</mosaic_0001>

<bundles_post_ra>
// kernel: tpu_custom_call.1
= control target key start
LH: loop header
LB: loop body
LE: loop exit
PB: predicated region body
PF: predicated region fallthrough
CT: control target
= control target key end

     0   :  { %7 = vsyncpa [#allocation3], 0  ;;  %s249_s0 = inlined_call_operand.hbm [shape: f32[8,256], index: 0, kind: input, shape index: {}]   ;;  %s250_s1 = inlined_call_operand.hbm [shape: f32[8,256], index: 1, kind: input, shape index: {}]   ;;  %s251_s2 = inlined_call_operand.hbm [shape: f32[8,256], index: 2, kind: output, shape index: {}]  }
   0x1   :  { %8 = vsyncpa [#allocation6], 0 }
   0x2   :  { %9 = vsyncpa [#allocation4], 0  ;;  %s195_s9 = smov [#allocation2]   ;;  %s196_s11 = smov [#allocation5]  }
   0x3   :  { %s16_s10 = sshll.u32 %s195_s9, 4  ;;  %s26_s12 = sshll.u32 %s196_s11, 4  ;;  %s17_s10 = int_to_ptr.vmem [resolvable:$true] %s16_s10  ;;  %s27_s12 = int_to_ptr.vmem [resolvable:$true] %s26_s12 }
   0x4   :  { %s123_s15 = scalar_lea.hbm %s249_s0, 256 }
   0x5   :  { %p124_p0 = scmp.ne.s32.totalorder %s249_s0, %s123_s15  ;;  %p127_p1 = scmp.lt.u32.totalorder %s123_s15, %s249_s0 }
   0x7   :  { %p129_p2 = pnand %p127_p1, %p124_p0 }
   0x9   :  { %132 = shalt.err (!%p129_p2)
}
   0xa   :  { %s133_s20 = scalar_lea.vmem %s17_s10, 256  ;;  %p138_p4 = scmp.lt.s32.totalorder %s17_s10, %s17_s10 }
   0xb   :  { %p134_p3 = scmp.ne.s32.totalorder %s17_s10, %s133_s20  ;;  %p139_p5 = scmp.lt.s32.totalorder %s133_s20, %s133_s20 }
   0xd   :  { %p140_p6 = por %p139_p5, %p138_p4 }
   0xf   :  { %p141_p7 = pnand %p140_p6, %p134_p3 }
  0x11   :  { %144 = shalt.err (!%p141_p7)
}
  0x12   :  { %19 = dma.hbm_to_vmem [thread:$0]  %s249_s0, 256, %s17_s10, [#allocation3]  }
  0x13   :  { %s145_s25 = scalar_lea.hbm %s250_s1, 256 }
  0x14   :  { %p146_p8 = scmp.ne.s32.totalorder %s250_s1, %s145_s25  ;;  %p149_p9 = scmp.lt.u32.totalorder %s145_s25, %s250_s1 }
  0x16   :  { %p151_p10 = pnand %p149_p9, %p146_p8 }
  0x18   :  { %154 = shalt.err (!%p151_p10)
}
  0x19   :  { %s155_s30 = scalar_lea.vmem %s27_s12, 256  ;;  %p160_p12 = scmp.lt.s32.totalorder %s27_s12, %s27_s12 }
  0x1a   :  { %p156_p11 = scmp.ne.s32.totalorder %s27_s12, %s155_s30  ;;  %p161_p13 = scmp.lt.s32.totalorder %s155_s30, %s155_s30 }
  0x1c   :  { %p162_p0 = por %p161_p13, %p160_p12 }
  0x1e   :  { %p163_p1 = pnand %p162_p0, %p156_p11 }
  0x20   :  { %166 = shalt.err (!%p163_p1)
}
  0x21   :  { %29 = dma.hbm_to_vmem [thread:$0]  %s250_s1, 256, %s27_s12, [#allocation6]  }
  0x22   :  { %189 = dma.done.wait [#allocation3], 256  }
  0x23   :  { %190 = vsyncadd [#allocation3], 4294967040 }
  0x24   :  { %191 = dma.done.wait [#allocation6], 256  }
  0x25   :  { %192 = vsyncadd [#allocation6], 4294967040  ;;  %v36_v0 = vld [vmem:[#allocation2] sm:$0xff]  ;;  %v37_v1 = vld [vmem:[#allocation2 + $0x8] sm:$0xff]  ;;  %s197_s1 = smov [#allocation7]  }
  0x26   :  { %v50_v2 = vand.u32 2147483647, %v36_v0  ;;  %v51_v3 = vand.u32 2147483647, %v37_v1  ;;  %v38_v8 = vld [vmem:[#allocation5] sm:$0xff]  ;;  %v39_v9 = vld [vmem:[#allocation5 + $0x8] sm:$0xff] }
  0x27   :  { %v40_v12 = vmul.f32 0.9, %v38_v8  ;;  %v41_v14 = vmul.f32 0.9, %v39_v9  ;;  %v44_v21 = vmax.f32 %v36_v0, 0.0  ;;  %v45_v25 = vmax.f32 %v37_v1, 0.0 }
  0x28   :  { %v52_v4 = vsub.f32 0.0, %v50_v2  ;;  %v53_v5 = vsub.f32 0.0, %v51_v3  ;;  %s98_s4 = sshll.u32 %s197_s1, 4  ;;  %s99_s4 = int_to_ptr.vmem [resolvable:$true] %s98_s4 }
  0x29   :  { %v42_v17 = vadd.f32 0.05, %v40_v12  ;;  %v43_v19 = vadd.f32 0.05, %v41_v14  ;;  %s167_s5 = scalar_lea.vmem %s99_s4, 256  ;;  %p172_p3 = scmp.lt.s32.totalorder %s99_s4, %s99_s4 }
  0x2a   :  { %v54_v6 = vmul.f32 1.442695, %v52_v4  ;;  %v56_v7 = vmul.f32 1.442695, %v53_v5  ;;  %p168_p2 = scmp.ne.s32.totalorder %s99_s4, %s167_s5  ;;  %p173_p4 = scmp.lt.s32.totalorder %s167_s5, %s167_s5 }
  0x2b   :  { %v46_v22 = vmul.f32 %v42_v17, %v36_v0  ;;  %v47_v26 = vmul.f32 %v43_v19, %v37_v1 }
  0x2c   :  { %111 = vpow2.f32 %v54_v6  ;;  %p174_p5 = por %p173_p4, %p172_p3 }
  0x2d   :  { %113 = vpow2.f32 %v56_v7  ;;  %v48_v30 = vsub.f32 %v44_v21, %v46_v22  ;;  %v49_v34 = vsub.f32 %v45_v25, %v47_v26 }
  0x2e   :  { %p175_p6 = pnand %p174_p5, %p168_p2 }
  0x36   :  { %v112_v10 = vpop.eup %111 }
  0x37   :  { %v114_v11 = vpop.eup %113  ;;  %v58_v13 = vadd.f32 1.0, %v112_v10  ;;  %v61_v16 = vmul.f32 -0.5, %v112_v10  ;;  %v64_v23 = vand.u32 2147483647, %v112_v10 }
  0x38   :  { %v67_v15 = vadd.f32 1.0, %v114_v11  ;;  %v70_v18 = vmul.f32 -0.5, %v114_v11  ;;  %v73_v27 = vand.u32 2147483647, %v114_v11 }
  0x39   :  { %115 = vlog2.f32 %v58_v13  ;;  %v62_v20 = vadd.f32 1.0, %v61_v16  ;;  %vm65_vm0 = vcmp.lt.f32.partialorder %v64_v23, 0.0004427343 }
  0x3a   :  { %117 = vlog2.f32 %v67_v15  ;;  %v71_v24 = vadd.f32 1.0, %v70_v18  ;;  %vm74_vm1 = vcmp.lt.f32.partialorder %v73_v27, 0.0004427343 }
  0x3b   :  { %v63_v28 = vmul.f32 %v112_v10, %v62_v20 }
  0x3c   :  { %v72_v31 = vmul.f32 %v114_v11, %v71_v24 }
  0x43   :  { %v116_v29 = vpop.eup %115 }
  0x44   :  { %v118_v32 = vpop.eup %117  ;;  %v60_v33 = vmul.f32 0.6931472, %v116_v29 }
  0x45   :  { %v69_v35 = vmul.f32 0.6931472, %v118_v32 }
  0x46   :  { %v66_v36 = vsel %vm65_vm0, %v63_v28, %v60_v33 }
  0x47   :  { %v76_v37 = vadd.f32 %v66_v36, %v48_v30  ;;  %v75_v38 = vsel %vm74_vm1, %v72_v31, %v69_v35 }
  0x48   :  { %v77_v39 = vadd.f32 %v75_v38, %v49_v34 }
  0x49   :  { %v78_v40 = vsub.f32 0.0, %v76_v37 }
  0x4a   :  { %v79_v41 = vsub.f32 0.0, %v77_v39 }
  0x4b   :  { %v80_v42 = vmul.f32 1.442695, %v78_v40 }
  0x4c   :  { %v82_v43 = vmul.f32 1.442695, %v79_v41 }
  0x4d   :  { %119 = vpow2.f32 %v80_v42 }
  0x4e   :  { %121 = vpow2.f32 %v82_v43 }
  0x57   :  { %v120_v44 = vpop.eup %119 }
  0x58   :  { %v122_v45 = vpop.eup %121  ;;  %v84_v46 = vsub.f32 1.0, %v120_v44 }
  0x59   :  { %v85_v47 = vsub.f32 1.0, %v122_v45 }
  0x5a   :  { %v86_v48 = vmul.f32 %v84_v46, %v84_v46 }
  0x5b   :  { %v87_v49 = vmul.f32 %v85_v47, %v85_v47 }
  0x5c   :  { %v88_v50 = vmul.f32 %v86_v48, %v76_v37 }
  0x5d   :  { %v89_v51 = vmul.f32 %v87_v49, %v77_v39 }
  0x5e   :  { %90 = vst [vmem:[#allocation7] sm:$0xff] %v88_v50 }
  0x5f   :  { %91 = vst [vmem:[#allocation7 + $0x8] sm:$0xff] %v89_v51 }
  0x60   :  { %178 = shalt.err (!%p175_p6)
}
  0x61   :  { %s179_s8 = scalar_lea.hbm %s251_s2, 256 }
  0x62   :  { %p180_p7 = scmp.ne.s32.totalorder %s251_s2, %s179_s8  ;;  %p183_p8 = scmp.lt.u32.totalorder %s179_s8, %s251_s2 }
  0x64   :  { %p185_p9 = pnand %p183_p8, %p180_p7 }
  0x66   :  { %188 = shalt.err (!%p185_p9)
}
  0x67   :  { %101 = dma.vmem_to_hbm [thread:$0]  %s99_s4, 256, %s251_s2, [#allocation4]  }
  0x68   :  { %193 = dma.done.wait [#allocation4], 256  }
  0x69   :  { %194 = vsyncadd [#allocation4], 4294967040 }
  0x6a   :  { %105 = vsyncpa [#allocation3], 1 }
  0x6b   :  { %106 = vsyncpa [#allocation6], 1 }
  0x6c   :  { %107 = vsyncpa [#allocation4], 1 }

</bundles_post_ra>
